<compile_context>
chip_gen: v7x
topology: tpu7x:2x2x1
jax: 0.10.0
libtpu: 0.0.40
codegen_flags: <defaults>
</compile_context>

<pallas_src>
import math
import functools

import jax
import jax.numpy as jnp
from jax.experimental import pallas as pl
from jax.experimental.pallas import tpu as pltpu


def _film_kernel(x_ref, cond_ref, w_ref, b_ref, out_ref, *, d_model):
    """One grid step: a block of `bb` batches.

    x_ref:    (bb, L, D)   input sequence slab
    cond_ref: (bb, 1, D)   conditioning vectors
    w_ref:    (D, 2D)      film_proj weight, already transposed to (in, out)
    b_ref:    (1, 2D)      film_proj bias
    out_ref:  (bb, L, D)
    """
    cond = jnp.squeeze(cond_ref[...], axis=1).astype(jnp.float32)          # (bb, D)

    # Fused FiLM projection: one MXU dot against the pre-transposed weight.
    proj = jnp.dot(cond, w_ref[...], preferred_element_type=jnp.float32)   # (bb, 2D)
    proj = proj + b_ref[...]

    gamma = proj[:, :d_model]                                              # (bb, D)
    beta = proj[:, d_model:]                                               # (bb, D)

    x = x_ref[...].astype(jnp.float32)                                     # (bb, L, D)
    y = x * gamma[:, None, :] + beta[:, None, :]                           # broadcast over L
    out_ref[...] = y.astype(out_ref.dtype)


def film_pallas(x, condition, weight, bias, *, batch_block=None):
    """FiLM forward.

    x:         (B, L, D)
    condition: (B, D)
    weight:    (2D, D)   PyTorch nn.Linear layout (out_features, in_features)
    bias:      (2D,)
    """
    B, L, D = x.shape
    assert condition.shape == (B, D)
    assert weight.shape == (2 * D, D)
    assert bias.shape == (2 * D,)

    # One-time host-side layout fixes (plain XLA ops, not per-grid-step work):
    #  - pre-transpose the Linear weight so the kernel consumes (in, out),
    #  - reshape bias / condition so every block's trailing dims equal the
    #    full array dims.
    w_t = weight.T.astype(jnp.float32)                # (D, 2D)
    b = bias.reshape(1, 2 * D).astype(jnp.float32)    # (1, 2D)
    cond3 = condition.reshape(B, 1, D)                # (B, 1, D)

    # Collapse the grid to at most 2 batch blocks: large steps (overhead-bound
    # regime at these shapes) while still giving v7x's two TensorCores one
    # parallel block each.
    if batch_block is None:
        batch_block = B // 2 if (B >= 2 and B % 2 == 0) else B
    assert B % batch_block == 0
    n_blocks = B // batch_block

    kernel = functools.partial(_film_kernel, d_model=D)

    return pl.pallas_call(
        kernel,
        out_shape=jax.ShapeDtypeStruct((B, L, D), x.dtype),
        grid_spec=pltpu.PrefetchScalarGridSpec(
            num_scalar_prefetch=0,
            grid=(n_blocks,),
            in_specs=[
                pl.BlockSpec((batch_block, L, D), lambda i: (i, 0, 0)),   # x
                pl.BlockSpec((batch_block, 1, D), lambda i: (i, 0, 0)),   # condition
                pl.BlockSpec((D, 2 * D), lambda i: (0, 0)),               # fused weight (pre-transposed)
                pl.BlockSpec((1, 2 * D), lambda i: (0, 0)),               # fused bias
            ],
            out_specs=pl.BlockSpec((batch_block, L, D), lambda i: (i, 0, 0)),
        ),
        compiler_params=pltpu.CompilerParams(dimension_semantics=("parallel",)),
    )(x, cond3, w_t, b)


def _reference(x, condition, weight, bias):
    """Pure-JAX reference matching the PyTorch FiLMLayer forward."""
    proj = condition @ weight.T + bias                 # (B, 2D)
    D = x.shape[-1]
    gamma, beta = proj[:, :D], proj[:, D:]
    return gamma[:, None, :] * x + beta[:, None, :]


if __name__ == "__main__":
    B, L, D = 2, 8, 32   # batch=2, seq=8, d_model=32

    key = jax.random.PRNGKey(0)
    k1, k2, k3, k4 = jax.random.split(key, 4)

    x = jax.random.normal(k1, (B, L, D), dtype=jnp.float32)
    condition = jax.random.normal(k2, (B, D), dtype=jnp.float32)

    # Deterministic synthetic Linear(d_model, 2*d_model) parameters (torch layout).
    lim = 1.0 / math.sqrt(D)
    weight = jax.random.uniform(k3, (2 * D, D), minval=-lim, maxval=lim, dtype=jnp.float32)
    bias = jax.random.uniform(k4, (2 * D,), minval=-lim, maxval=lim, dtype=jnp.float32)

    out = film_pallas(x, condition, weight, bias)
    out = jax.block_until_ready(out)

    ref = _reference(x, condition, weight, bias)
    assert out.shape == (B, L, D)
    assert jnp.max(jnp.abs(out - ref)) < 1e-4, "mismatch vs reference"

    print("KERNEL_OK")
</pallas_src>

<mosaic_0001>
module attributes {stable_mosaic.version = 11 : i64} {
  func.func @_film_kernel(%arg0: i32, %arg1: memref<1x8x32xf32, #tpu.memory_space<vmem>>, %arg2: memref<1x1x32xf32, #tpu.memory_space<vmem>>, %arg3: memref<32x64xf32, #tpu.memory_space<vmem>>, %arg4: memref<1x64xf32, #tpu.memory_space<vmem>>, %arg5: memref<1x8x32xf32, #tpu.memory_space<vmem>>) attributes {dimension_semantics = [#tpu.dimension_semantics<parallel>], iteration_bounds = array<i64: 2>, scalar_prefetch = 0 : i64, scratch_operands = 0 : i64, tpu.core_type = #tpu.core_type<tc>, window_params = [{transform_indices = @transform_0, window_bounds = array<i64: 1, 8, 32>}, {transform_indices = @transform_1, window_bounds = array<i64: 1, 1, 32>}, {pipeline_mode = #tpu.pipeline_mode<synchronous>, transform_indices = @transform_2, window_bounds = array<i64: 32, 64>}, {pipeline_mode = #tpu.pipeline_mode<synchronous>, transform_indices = @transform_3, window_bounds = array<i64: 1, 64>}, {transform_indices = @transform_4, window_bounds = array<i64: 1, 8, 32>}]} {
    %c0 = arith.constant 0 : index
    %c0_0 = arith.constant 0 : index
    %c0_1 = arith.constant 0 : index
    %0 = vector.load %arg2[%c0, %c0_0, %c0_1] : memref<1x1x32xf32, #tpu.memory_space<vmem>>, vector<1x1x32xf32>
    %1 = vector.shape_cast %0 : vector<1x1x32xf32> to vector<1x32xf32>
    %c0_2 = arith.constant 0 : index
    %c0_3 = arith.constant 0 : index
    %2 = vector.load %arg3[%c0_2, %c0_3] : memref<32x64xf32, #tpu.memory_space<vmem>>, vector<32x64xf32>
    %cst = arith.constant dense<0.000000e+00> : vector<1x64xf32>
    %3 = tpu.matmul %1, %2, %cst {dimension_numbers = #tpu.dot_dimension_numbers<[1], [0], [0], [1], [0, 0, 1, 1], [], []>} : vector<1x32xf32>, vector<32x64xf32>, vector<1x64xf32> -> vector<1x64xf32>
    %c0_4 = arith.constant 0 : index
    %c0_5 = arith.constant 0 : index
    %4 = vector.load %arg4[%c0_4, %c0_5] : memref<1x64xf32, #tpu.memory_space<vmem>>, vector<1x64xf32>
    %5 = arith.addf %3, %4 : vector<1x64xf32>
    %6 = vector.extract_strided_slice %5 {offsets = [0, 0], sizes = [1, 32], strides = [1, 1]} : vector<1x64xf32> to vector<1x32xf32>
    %7 = vector.extract_strided_slice %5 {offsets = [0, 32], sizes = [1, 32], strides = [1, 1]} : vector<1x64xf32> to vector<1x32xf32>
    %c0_6 = arith.constant 0 : index
    %c0_7 = arith.constant 0 : index
    %c0_8 = arith.constant 0 : index
    %8 = vector.load %arg1[%c0_6, %c0_7, %c0_8] : memref<1x8x32xf32, #tpu.memory_space<vmem>>, vector<1x8x32xf32>
    %9 = vector.shape_cast %6 : vector<1x32xf32> to vector<1x1x32xf32>
    %10 = vector.broadcast %9 : vector<1x1x32xf32> to vector<1x8x32xf32>
    %11 = arith.mulf %8, %10 : vector<1x8x32xf32>
    %12 = vector.shape_cast %7 : vector<1x32xf32> to vector<1x1x32xf32>
    %13 = vector.broadcast %12 : vector<1x1x32xf32> to vector<1x8x32xf32>
    %14 = arith.addf %11, %13 : vector<1x8x32xf32>
    %c0_9 = arith.constant 0 : index
    %c0_10 = arith.constant 0 : index
    %c0_11 = arith.constant 0 : index
    %15 = vector.load %arg5[%c0_9, %c0_10, %c0_11] : memref<1x8x32xf32, #tpu.memory_space<vmem>>, vector<1x8x32xf32>
    tpu.vector_store %arg5[%c0_9, %c0_10, %c0_11], %14 {strides = array<i32>} : memref<1x8x32xf32, #tpu.memory_space<vmem>>, vector<1x8x32xf32>,
    return
  }
  func.func @transform_0(%arg0: i32) -> (i32, i32, i32) {
    %c0_i32 = arith.constant 0 : i32
    %c0_i32_0 = arith.constant 0 : i32
    %c0_i32_1 = arith.constant 0 : i32
    return %arg0, %c0_i32, %c0_i32_0 : i32, i32, i32
  }
  func.func @transform_1(%arg0: i32) -> (i32, i32, i32) {
    %c0_i32 = arith.constant 0 : i32
    %c0_i32_0 = arith.constant 0 : i32
    %c0_i32_1 = arith.constant 0 : i32
    return %arg0, %c0_i32, %c0_i32_0 : i32, i32, i32
  }
  func.func @transform_2(%arg0: i32) -> (i32, i32) {
    %c0_i32 = arith.constant 0 : i32
    %c0_i32_0 = arith.constant 0 : i32
    %c0_i32_1 = arith.constant 0 : i32
    return %c0_i32, %c0_i32_0 : i32, i32
  }
  func.func @transform_3(%arg0: i32) -> (i32, i32) {
    %c0_i32 = arith.constant 0 : i32
    %c0_i32_0 = arith.constant 0 : i32
    %c0_i32_1 = arith.constant 0 : i32
    return %c0_i32, %c0_i32_0 : i32, i32
  }
  func.func @transform_4(%arg0: i32) -> (i32, i32, i32) {
    %c0_i32 = arith.constant 0 : i32
    %c0_i32_0 = arith.constant 0 : i32
    %c0_i32_1 = arith.constant 0 : i32
    return %arg0, %c0_i32, %c0_i32_0 : i32, i32, i32
  }
}

</mosaic_0001>

<bundles_post_ra>
// kernel: tpu_custom_call.1
= control target key start
LH: loop header
LB: loop body
LE: loop exit
PB: predicated region body
PF: predicated region fallthrough
CT: control target
= control target key end

     0   :  { %9 = vsyncpa [#allocation3], 0  ;;  %s914_s0 = inlined_call_operand.hbm [shape: f32[2,8,32], index: 0, kind: input, shape index: {}]   ;;  %s915_s1 = inlined_call_operand.vmem [shape: f32[2,1,32], index: 1, kind: input, shape index: {}]   ;;  %s916_s2 = inlined_call_operand.hbm [shape: f32[32,64], index: 2, kind: input, shape index: {}]   ;;  %s917_s3 = inlined_call_operand.vmem [shape: f32[1,64], index: 3, kind: input, shape index: {}]   ;;  %s918_s4 = inlined_call_operand.hbm [shape: f32[2,8,32], index: 4, kind: output, shape index: {}]  }
   0x1   :  { %11 = vsyncpa [#allocation3 + $0x1], 0 }
   0x2   :  { %12 = vsyncpa [#allocation6], 0 }
   0x3   :  { %13 = vsyncpa [#allocation4], 0 }
   0x4   :  { %15 = vsyncpa [#allocation4 + $0x1], 0  ;;  %s701_s15 = smov 0   ;;  %s703_s16 = smov 0  }
   0x5   :  { %s705_s17 = smov 0   ;;  %s707_s18 = smov 0  }
   0x6 LB: > { %s722_s19 = sadd.s32 4294967295, %s665_s18   ;;  %s437_s20 = sadd.s32 4294967294, %s665_s18   ;;  %s665_s18 = sphi %s707_s18, %s938_s18   ;;  %s661_s17 = sphi %s705_s17, %s937_s17   ;;  %s657_s16 = sphi %s703_s16, %s936_s16   ;;  %s653_s15 = sphi %s701_s15, %s935_s15  }
   0x7   : > { %p41_p0 = scmp.ne.s32.totalorder %s657_s16, %s653_s15  ;;  %p919_p1 = scmp.eq.s32.totalorder %s722_s19, 0 }
   0x8   : > { %p139_p3 = scmp.eq.s32.totalorder %s437_s20, 1  ;;  %p438_p5 = scmp.ge.s32.totalorder %s665_s18, 1 }
   0x9   : > { %p731_p4 = por %p919_p1, %p41_p0  ;;  %p146_p7 = scmp.lt.s32.totalorder %s665_s18, 3 }
   0xa   : > { %p736_p6 = por %p139_p3, %p41_p0  ;;  %s667_s24 = smov [#allocation5]  }
   0xb   : > { %s922_s21 = scalar_select %p731_p4, 1, 0 }
   0xc   : > { %s923_s22 = scalar_select %p736_p6, 1, 0 }
   0xd   : > { %p741_p8 = pnand %p438_p5, %p146_p7  ;;  %s158_s25 = sshll.u32 %s667_s24, 4  ;;  %s745_s25 = int_to_ptr.vmem [resolvable:$true] %s158_s25 }
   0xe   : > { %s757_s27 = sadd.s32 1, %s665_s18   ;;  %s28_s28 = sadd.s32 1, %s661_s17 }
   0xf   : > { %s924_s23 = scalar_select %p741_p8, 1, 0 }
  0x10   : > { %p482_p9 = pneg %p741_p8  ;;  %s25_s29 = ssub.s32 %s665_s18, %s757_s27 }
  0x11   : > { %s537_s6 = scalar_lea.hbm %s916_s2, 512 }
  0x12   : > { %p752_p11 = pnand %p482_p9, %p919_p1  ;;  %p538_p12 = scmp.ne.s32.totalorder %s916_s2, %s537_s6 }
  0x13   : > { %p544_p5 = scmp.lt.u32.totalorder %s537_s6, %s916_s2 }
  0x14   : > { %p539_p13 = pneg %p752_p11 }
  0x16   : > { %p540_p0 = pnand %p539_p13, %p538_p12 }
  0x18   : > { %p541_p3 = pneg %p540_p0 }
  0x1a   : > { %p546_p7 = pnand %p544_p5, %p541_p3 }
  0x1c   : > { %549 = shalt.err (!%p546_p7)
}
  0x1d   : > { %s550_s11 = scalar_lea.vmem %s745_s25, 512  ;;  %p558_p2 = scmp.lt.s32.totalorder %s745_s25, %s745_s25 }
  0x1e   : > { %p551_p9 = scmp.ne.s32.totalorder %s745_s25, %s550_s11  ;;  %p559_p6 = scmp.lt.s32.totalorder %s550_s11, %s550_s11 }
  0x20   : > { %p553_p10 = pnand %p551_p9, %p539_p13  ;;  %p560_p4 = por %p559_p6, %p558_p2 }
  0x22   : > { %p554_p1 = pneg %p553_p10 }
  0x24   : > { %p561_p8 = pnand %p560_p4, %p554_p1 }
  0x26   : > { %564 = shalt.err (!%p561_p8)
}
  0x27   : > { %s668_s12 = smov 128   ;;  %s669_s13 = smov 8  }
  0x28   : > { %485 = dma.hbm_to_vmem [thread:$0]  (!%p752_p11), %s916_s2, 512, %s745_s25, [#allocation6], %s668_s12, %s668_s12, %s669_s13  }
  0x29   : > { %p26_p2 = scmp.eq.s32.totalorder %s25_s29, 0  ;;  %p35_p1 = scmp.ne.s32.totalorder %s661_s17, %s657_s16 }
  0x2a   : > { %p36_p4 = scmp.eq.s32.totalorder %s665_s18, 0  ;;  %p495_p6 = scmp.lt.s32.totalorder %s665_s18, 2 }
  0x2b   : > { %s788_s24 = scalar_select %p26_p2, %s661_s17, %s28_s28  }
  0x2c   : > { %p37_p8 = por %p36_p4, %p35_p1  ;;  %p926_p10 = scmp.eq.s32.totalorder %s722_s19, 1 }
  0x2d   : > { %s175_s5 = sand.u32 1, %s661_s17   ;;  %s442_s6 = sshll.u32 %s665_s18, 7 }
  0x2e   : > { %p792_p12 = por %p926_p10, %p35_p1  ;;  %s441_s7 = sshll.u32 %s175_s5, 3 }
  0x2f   : > { %s801_s9 = scalar_lea.hbm %s914_s0, %s442_s6  ;;  %s179_s25 = scalar_lea.vmem [#allocation2], %s441_s7 }
  0x30   : > { %s186_s28 = sshll.u32 %s179_s25, 4  ;;  %p803_p11 = pnand %p495_p6, %p37_p8  ;;  %s807_s28 = int_to_ptr.vmem [resolvable:$true] %s186_s28 }
  0x31   : > { %s176_s10 = scalar_lea.sflag [#allocation3], %s175_s5  ;;  %s565_s11 = scalar_lea.hbm %s801_s9, 128 }
  0x32   : > { %p566_p13 = scmp.ne.s32.totalorder %s801_s9, %s565_s11  ;;  %p567_p0 = pneg %p803_p11 }
  0x33   : > { %s570_s14 = scalar_lea.hbm %s914_s0, 256  ;;  %p571_p7 = scmp.lt.u32.totalorder %s801_s9, %s914_s0 }
  0x34   : > { %p568_p3 = pnand %p567_p0, %p566_p13  ;;  %p572_p9 = scmp.lt.u32.totalorder %s570_s14, %s565_s11 }
  0x35   : > { %p574_p1 = scmp.lt.u32.totalorder %s565_s11, %s801_s9 }
  0x36   : > { %p569_p5 = pneg %p568_p3  ;;  %p573_p2 = por %p572_p9, %p571_p7 }
  0x38   : > { %p575_p4 = por %p574_p1, %p573_p2 }
  0x3a   : > { %p576_p6 = pnand %p575_p4, %p569_p5 }
  0x3c   : > { %579 = shalt.err (!%p576_p6)
}
  0x3d   : > { %s580_s5 = scalar_lea.vmem %s807_s28, 128  ;;  %s670_s7 = smov [#allocation2]  }
  0x3e   : > { %p581_p8 = scmp.ne.s32.totalorder %s807_s28, %s580_s5  ;;  %s585_s26 = sshll.u32 %s670_s7, 4  ;;  %s586_s26 = int_to_ptr.vmem [resolvable:$false] %s585_s26 }
  0x3f   : > { %s587_s8 = scalar_lea.vmem %s586_s26, 256  ;;  %p588_p3 = scmp.lt.s32.totalorder %s807_s28, %s586_s26 }
  0x40   : > { %p583_p10 = pnand %p581_p8, %p567_p0  ;;  %p589_p7 = scmp.lt.s32.totalorder %s587_s8, %s580_s5 }
  0x42   : > { %p584_p13 = pneg %p583_p10  ;;  %p590_p9 = por %p589_p7, %p588_p3 }
  0x44   : > { %p591_p2 = pnand %p590_p9, %p584_p13 }
  0x46   : > { %594 = shalt.err (!%p591_p2)
}
  0x47   : > { %489 = dma.hbm_to_vmem [thread:$0]  (!%p803_p11), %s801_s9, 128, %s807_s28, %s176_s10  }
  0x48   : > { %p929_p5 = scmp.ne.s32.totalorder %s924_s23, 0 }
  0x49   : > { %s837_s25 = sand.u32 (!%p929_p5), 1, %s657_s16   ;;  %p930_p0 = scmp.ne.s32.totalorder (!%p929_p5), %s922_s21, 0 }
  0x4a   : > { %201 = sbr.rel (%p929_p5) target bundleno = 442 (0x1ba), region = 36  ;;  %s444_s11 = sshll.u32 (!%p929_p5), %s837_s25, 3 }
  0x4b   : > { %s204_s12 = scalar_lea.sflag (!%p929_p5), [#allocation3], %s837_s25  ;;  %s843_s13 = scalar_lea.vmem (!%p929_p5), [#allocation2], %s444_s11 }
  0x51   : > { %640 = dma.done.wait (%p930_p0), %s204_s12, 128  }
  0x52   : > { %642 = vsyncadd (%p930_p0), %s204_s12, 4294967168  ;;  %p931_p11 = scmp.eq.s32.totalorder %s722_s19, 0 }
  0x54   : > { %644 = dma.done.wait (%p931_p11), [#allocation6], 512   ;;  %p932_p1 = pmov %p931_p11 }
  0x55   : > { %v671_v0 = vmov 0.0|0.0   ;;  %vm672_vm0 = vmmov 0   ;;  %v673_v1 = vmov 0.0   ;;  %p239_p4 = scmp.lt.s32.totalorder %s722_s19, 1  ;;  %v243_v2 = vld [vmem:[#allocation5] sm:$0xff]  ;;  %v244_v3 = vld [vmem:[#allocation5 + $0x8] sm:$0xff]  ;;  %v323_v9 = vlaneseq }
  0x56   : > { %646 = vsyncadd (%p932_p1), [#allocation6], 4294966784  ;;  %468 = vmatprep.subr.bf16.mxu0 %v671_v0  ;;  %465 = vmatprep.mubr.msk.f32.mxu0 %vm672_vm0, %v673_v1  ;;  %v245_v4 = vld [vmem:[#allocation5 + $0x10] sm:$0xff]  ;;  %v469_v5 = vpack.c.bf16 %v244_v3, %v243_v2  ;;  %v246_v6 = vld [vmem:[#allocation5 + $0x18] sm:$0xff]  ;;  %vm248_vm1 = vcmask 261120   ;;  %s674_s14 = smov 96  }
  0x57   : > { %s240_s23 = scalar_select %p239_p4, %s722_s19, 1  ;;  %v472_v7 = vpack.c.bf16 %v246_v6, %v245_v4  ;;  %v324_v10 = vshrl.u32 %v323_v9, 7  ;;  %v247_v11 = vld [vmem:[%s917_s3] sm:$0x1] }
  0x58   : > { %470 = vmatpush3.bf16.msra.mxu0 %v469_v5  ;;  %v322_v17 = vld [vmem:[%s843_s13] sm:$0xff]  ;;  %s449_s20 = sshll.u32 %s722_s19, 7  ;;  %s238_s6 = scalar_lea.vmem [#allocation7], %s444_s11 }
  0x59   : > { %471 = vmatprep.subr.bf16.mxu0 %v671_v0  ;;  %s241_s28 = scalar_lea.vmem %s915_s1, %s240_s23  ;;  %v325_v12 = vsub.s32 0, %v324_v10  ;;  %s348_s5 = sshll.u32 %s238_s6, 4  ;;  %s871_s5 = int_to_ptr.vmem [resolvable:$true] %s348_s5 }
  0x5a   : > { %v242_v8 = vld [vmem:[%s241_s28] sm:$0x1]  ;;  %s869_s8 = scalar_lea.hbm %s918_s4, %s449_s20  ;;  %s335_s12 = scalar_lea.sflag [#allocation4], %s837_s25 }
  0x5b   : > { %s595_s19 = scalar_lea.vmem %s871_s5, 128  ;;  %s675_s11 = smov [#allocation7]  }
  0x5c   : > { %473 = vmatpush3.bf16.msra.mxu0 %v472_v7  ;;  %p596_p6 = scmp.ne.s32.totalorder %s871_s5, %s595_s19  ;;  %s599_s13 = sshll.u32 %s675_s11, 4  ;;  %s600_s13 = int_to_ptr.vmem [resolvable:$false] %s599_s13 }
  0x5d   : > { %s601_s23 = scalar_lea.vmem %s600_s13, 256  ;;  %p602_p13 = scmp.lt.s32.totalorder %s871_s5, %s600_s13 }
  0x5e   : > { %p597_p8 = pnand %p596_p6, %p792_p12  ;;  %p603_p3 = scmp.lt.s32.totalorder %s601_s23, %s595_s19 }
  0x5f   : > { %466 = vmatmul.mubr.msk.f32.vlgmr.msra.gmra.mrb[0].mxu0 %vm248_vm1, %v242_v8 }
  0x60   : > { %p598_p10 = pneg %p597_p8  ;;  %p604_p7 = por %p603_p3, %p602_p13 }
  0x62   : > { %p605_p9 = pnand %p604_p7, %p598_p10 }
 0x132   : > { %v318_v13 = vpop.f32.mrb[0].mxu0 }
 0x133   : > { %v319_v14 = vadd.f32 %v318_v13, %v247_v11  ;;  %v467_v15 = vpop.f32.mrb[1].mxu0 }
 0x135   : > { %v326_v16 = vrot.slane %v319_v14, %v325_v12 }
 0x137   : > { %329 = vrot.lane.b32.xlu0 %v326_v16, %s674_s14  ;;  %v327_v18 = vmul.f32 %v326_v16, %v322_v17 }
 0x1a9   : > { %v330_v19 = vpop.permute.xlu0 %329 }
 0x1aa   : > { %v332_v20 = vadd.f32 %v330_v19, %v327_v18 }
 0x1ac   : > { %333 = vst.msk [vmem:[%s238_s6] sm:$0xff] %vm248_vm1, %v332_v20 }
 0x1ad   : > { %608 = shalt.err (!%p605_p9)
}
 0x1ae   : > { %s609_s25 = scalar_lea.hbm %s869_s8, 128  ;;  %s613_s28 = scalar_lea.hbm %s918_s4, 256 }
 0x1af   : > { %p610_p2 = scmp.ne.s32.totalorder %s869_s8, %s609_s25  ;;  %p614_p11 = scmp.lt.u32.totalorder %s869_s8, %s918_s4 }
 0x1b0   : > { %p615_p1 = scmp.lt.u32.totalorder %s613_s28, %s609_s25  ;;  %p617_p6 = scmp.lt.u32.totalorder %s609_s25, %s869_s8 }
 0x1b1   : > { %p611_p5 = pnand %p610_p2, %p792_p12 }
 0x1b2   : > { %p616_p4 = por %p615_p1, %p614_p11 }
 0x1b3   : > { %p612_p0 = pneg %p611_p5 }
 0x1b4   : > { %p618_p8 = por %p617_p6, %p616_p4 }
 0x1b6   : > { %p619_p10 = pnand %p618_p8, %p612_p0 }
 0x1b8   : > { %622 = shalt.err (!%p619_p10)
}
 0x1b9   : > { %480 = dma.vmem_to_hbm [thread:$0]  (%p792_p12), %s871_s5, 128, %s869_s8, %s335_s12  }
 0x1ba PF: > { %s360_s14 = sand.u32 1, %s653_s15   ;;  %p933_p13 = scmp.ne.s32.totalorder %s923_s22, 0 }
 0x1bb   : > { %p934_p3 = scmp.ge.s32.totalorder %s665_s18, 2  ;;  %s361_s20 = scalar_lea.sflag [#allocation4], %s360_s14 }
 0x1bd   : > { %p491_p7 = pnand %p934_p3, %p933_p13 }
 0x1bf   : > { %648 = dma.done.wait (!%p491_p7), %s361_s20, 128  }
 0x1c0   : > { %650 = vsyncadd (!%p491_p7), %s361_s20, 4294967168  ;;  %p18_p9 = scmp.ge.s32.totalorder %s757_s27, 4   ;;  %s935_s15 = smov %s657_s16 }
 0x1c1   : > { %s936_s16 = smov %s661_s17  ;;  %s937_s17 = smov %s788_s24 }
 0x1c2   : > { %s938_s18 = smov %s757_s27  ;;  %20 = sbr.rel (!%p18_p9) target bundleno = 6 (0x6), region = 88 }
 0x1c9   :  { %366 = vsyncpa [#allocation3], 1 }
 0x1ca   :  { %368 = vsyncpa [#allocation3 + $0x1], 1 }
 0x1cb   :  { %369 = vsyncpa [#allocation6], 1 }
 0x1cc   :  { %370 = vsyncpa [#allocation4], 1 }
 0x1cd   :  { %372 = vsyncpa [#allocation4 + $0x1], 1 }

</bundles_post_ra>
